<compile_context>
chip_gen: v7x
topology: tpu7x:2x2x1
jax: 0.10.0
libtpu: 0.0.40
codegen_flags: <defaults>
</compile_context>

<pallas_src>
import jax
import jax.numpy as jnp
from jax import lax
from jax.experimental import pallas as pl
from jax.experimental.pallas import tpu as pltpu

HIDDEN = 128


def _make_kernel(hw: int, tile_p: int, ragged: bool):
    def kernel(x_ref, w1_ref, b1_ref, w2_ref, o_ref):
        # x_ref:  (1, C_in, tile_p)   channels on sublanes, pixels on lanes
        # w1_ref: (HIDDEN, C_in)      conv1 weight, PyTorch orientation
        # b1_ref: (HIDDEN, 1)
        # w2_ref: (C_out, HIDDEN)     conv2 weight, PyTorch orientation
        # o_ref:  (1, C_out, tile_p)
        x = x_ref[0]                                                   # (C_in, tile_p)
        if ragged:
            # Zero the out-of-bounds pixel columns of the final (partial) tile.
            col = pl.program_id(1) * tile_p + lax.broadcasted_iota(
                jnp.int32, (1, tile_p), 1)
            x = jnp.where(col < hw, x, 0.0)
        h = jnp.dot(w1_ref[...], x, preferred_element_type=jnp.float32)  # (128, tile_p)
        h = jnp.maximum(h + b1_ref[...], 0.0)
        y = jnp.dot(w2_ref[...], h, preferred_element_type=jnp.float32)  # (C_out, tile_p)
        o_ref[0] = y.astype(o_ref.dtype)

    return kernel


def _pick_pixel_tile(hw: int, max_tile: int) -> int:
    """Balanced, lane-dense pixel tile.

    Returns the full extent when hw fits in one tile, otherwise a multiple of
    128 chosen so the 128-lane groups are spread evenly over grid steps
    (the last tile may be ragged; the kernel/edge-DMA handle it).
    """
    groups = -(-hw // 128)                 # ceil(hw / 128)
    max_groups = max(max_tile // 128, 1)
    n_blocks = -(-groups // max_groups)    # grid steps along the pixel axis
    tile = 128 * (-(-groups // n_blocks))  # balance groups across steps
    return hw if tile >= hw else tile


def update_net_forward(x_nchw, w1, b1, w2, *, max_tile_p=8192):
    """x_nchw: (B, C_in, H, W); w1: (128, C_in); b1: (128,); w2: (C_out, 128)."""
    B, C_in, H, W = x_nchw.shape
    C_out = w2.shape[0]
    HW = H * W

    tile_p = _pick_pixel_tile(HW, max_tile_p)
    n_tiles = pl.cdiv(HW, tile_p)
    ragged = (HW % tile_p) != 0

    # Free reshapes only -- no transpose / pad passes over HBM.
    x3 = x_nchw.reshape(B, C_in, HW)
    b1_2d = b1.reshape(HIDDEN, 1)

    kernel = _make_kernel(HW, tile_p, ragged)

    out3 = pl.pallas_call(
        kernel,
        out_shape=jax.ShapeDtypeStruct((B, C_out, HW), x_nchw.dtype),
        grid_spec=pltpu.PrefetchScalarGridSpec(
            num_scalar_prefetch=0,
            grid=(B, n_tiles),
            in_specs=[
                pl.BlockSpec((1, C_in, tile_p), lambda b, p: (b, 0, p)),
                pl.BlockSpec((HIDDEN, C_in), lambda b, p: (0, 0)),
                pl.BlockSpec((HIDDEN, 1), lambda b, p: (0, 0)),
                pl.BlockSpec((C_out, HIDDEN), lambda b, p: (0, 0)),
            ],
            out_specs=pl.BlockSpec((1, C_out, tile_p), lambda b, p: (b, 0, p)),
        ),
        compiler_params=pltpu.CompilerParams(
            dimension_semantics=("parallel", "parallel"),
            # Peak VMEM at tile_p=8192: ~4 MiB hidden f32 + ~1 MiB double-buffered
            # I/O blocks -> comfortably under 32 MiB on v5e/v6e/v7x.
            vmem_limit_bytes=32 * 1024 * 1024,
        ),
    )(x3, w1, b1_2d, w2)

    return out3.reshape(B, C_out, H, W)


def init_params(key, in_channels, out_channels, zero_bias=True):
    """Matches the PyTorch module's shapes/orientation.

    Conv2d(in, 128, 1):              weight (128, in, 1, 1) -> stored (128, in).
    Conv2d(128, out, 1, bias=False): weight (out, 128, 1, 1) -> stored (out, 128).
    Bias is zeroed when zero_bias=True (the module's init_weights).
    """
    k1, k2, k3 = jax.random.split(key, 3)
    bound1 = 1.0 / jnp.sqrt(in_channels)   # PyTorch default conv init, 1x1 kernel
    bound2 = 1.0 / jnp.sqrt(HIDDEN)
    w1 = jax.random.uniform(k1, (HIDDEN, in_channels), jnp.float32, -bound1, bound1)
    if zero_bias:
        b1 = jnp.zeros((HIDDEN,), jnp.float32)
    else:
        b1 = jax.random.uniform(k3, (HIDDEN,), jnp.float32, -bound1, bound1)
    w2 = jax.random.uniform(k2, (out_channels, HIDDEN), jnp.float32, -bound2, bound2)
    return w1, b1, w2


def _reference(x_nchw, w1, b1, w2):
    # Pure-JAX reference of the same math (sanity check).
    h = jnp.einsum("oc,bchw->bohw", w1, x_nchw) + b1[None, :, None, None]
    h = jnp.maximum(h, 0.0)
    return jnp.einsum("of,bfhw->bohw", w2, h)


if __name__ == "__main__":
    key = jax.random.PRNGKey(0)
    kx, kp = jax.random.split(key)

    B, C_in, C_out, H, W = 2, 4, 4, 16, 16
    x = jax.random.normal(kx, (B, C_in, H, W), jnp.float32)
    w1, b1, w2 = init_params(kp, C_in, C_out, zero_bias=True)

    out = jax.block_until_ready(update_net_forward(x, w1, b1, w2))
    ref = _reference(x, w1, b1, w2)
    assert out.shape == (B, C_out, H, W)
    assert jnp.allclose(out, ref, atol=1e-5, rtol=1e-5)

    # Also exercise the ragged-tile path (pixel count not a multiple of the tile).
    H2, W2 = 17, 17  # HW = 289, tiled as 256 + ragged 33 with max_tile_p=256
    x2 = jax.random.normal(kx, (B, C_in, H2, W2), jnp.float32)
    out2 = jax.block_until_ready(update_net_forward(x2, w1, b1, w2, max_tile_p=256))
    ref2 = _reference(x2, w1, b1, w2)
    assert jnp.allclose(out2, ref2, atol=1e-5, rtol=1e-5)

    print("KERNEL_OK")
</pallas_src>

<mosaic_0001>
module attributes {stable_mosaic.version = 11 : i64} {
  func.func @kernel(%arg0: i32, %arg1: i32, %arg2: memref<1x4x256xf32, #tpu.memory_space<vmem>>, %arg3: memref<128x4xf32, #tpu.memory_space<vmem>>, %arg4: memref<128x1xf32, #tpu.memory_space<vmem>>, %arg5: memref<4x128xf32, #tpu.memory_space<vmem>>, %arg6: memref<1x4x256xf32, #tpu.memory_space<vmem>>) attributes {dimension_semantics = [#tpu.dimension_semantics<parallel>, #tpu.dimension_semantics<parallel>], iteration_bounds = array<i64: 2, 1>, scalar_prefetch = 0 : i64, scratch_operands = 0 : i64, tpu.core_type = #tpu.core_type<tc>, window_params = [{transform_indices = @transform_0, window_bounds = array<i64: 1, 4, 256>}, {pipeline_mode = #tpu.pipeline_mode<synchronous>, transform_indices = @transform_1, window_bounds = array<i64: 128, 4>}, {pipeline_mode = #tpu.pipeline_mode<synchronous>, transform_indices = @transform_2, window_bounds = array<i64: 128, 1>}, {pipeline_mode = #tpu.pipeline_mode<synchronous>, transform_indices = @transform_3, window_bounds = array<i64: 4, 128>}, {transform_indices = @transform_4, window_bounds = array<i64: 1, 4, 256>}]} {
    %c0 = arith.constant 0 : index
    %c0_0 = arith.constant 0 : index
    %c0_1 = arith.constant 0 : index
    %0 = vector.load %arg2[%c0, %c0_0, %c0_1] : memref<1x4x256xf32, #tpu.memory_space<vmem>>, vector<1x4x256xf32>
    %1 = vector.shape_cast %0 : vector<1x4x256xf32> to vector<4x256xf32>
    %c0_2 = arith.constant 0 : index
    %c0_3 = arith.constant 0 : index
    %2 = vector.load %arg3[%c0_2, %c0_3] : memref<128x4xf32, #tpu.memory_space<vmem>>, vector<128x4xf32>
    %cst = arith.constant dense<0.000000e+00> : vector<128x256xf32>
    %3 = tpu.matmul %2, %1, %cst {dimension_numbers = #tpu.dot_dimension_numbers<[1], [0], [0], [1], [0, 0, 1, 1], [], []>} : vector<128x4xf32>, vector<4x256xf32>, vector<128x256xf32> -> vector<128x256xf32>
    %c0_4 = arith.constant 0 : index
    %c0_5 = arith.constant 0 : index
    %4 = vector.load %arg4[%c0_4, %c0_5] : memref<128x1xf32, #tpu.memory_space<vmem>>, vector<128x1xf32>
    %5 = vector.broadcast %4 : vector<128x1xf32> to vector<128x256xf32>
    %6 = arith.addf %3, %5 : vector<128x256xf32>
    %cst_6 = arith.constant 0.000000e+00 : f32
    %7 = vector.broadcast %cst_6 : f32 to vector<128x256xf32>
    %8 = arith.maximumf %6, %7 : vector<128x256xf32>
    %c0_7 = arith.constant 0 : index
    %c0_8 = arith.constant 0 : index
    %9 = vector.load %arg5[%c0_7, %c0_8] : memref<4x128xf32, #tpu.memory_space<vmem>>, vector<4x128xf32>
    %cst_9 = arith.constant dense<0.000000e+00> : vector<4x256xf32>
    %10 = tpu.matmul %9, %8, %cst_9 {dimension_numbers = #tpu.dot_dimension_numbers<[1], [0], [0], [1], [0, 0, 1, 1], [], []>} : vector<4x128xf32>, vector<128x256xf32>, vector<4x256xf32> -> vector<4x256xf32>
    %c0_10 = arith.constant 0 : index
    %c0_11 = arith.constant 0 : index
    %c0_12 = arith.constant 0 : index
    %11 = vector.load %arg6[%c0_10, %c0_11, %c0_12] : memref<1x4x256xf32, #tpu.memory_space<vmem>>, vector<1x4x256xf32>
    %12 = vector.shape_cast %11 : vector<1x4x256xf32> to vector<4x256xf32>
    %13 = vector.shape_cast %10 : vector<4x256xf32> to vector<1x4x256xf32>
    tpu.vector_store %arg6[%c0_10, %c0_11, %c0_12], %13 {strides = array<i32>} : memref<1x4x256xf32, #tpu.memory_space<vmem>>, vector<1x4x256xf32>,
    return
  }
  func.func @transform_0(%arg0: i32, %arg1: i32) -> (i32, i32, i32) {
    %c0_i32 = arith.constant 0 : i32
    %c0_i32_0 = arith.constant 0 : i32
    return %arg0, %c0_i32, %arg1 : i32, i32, i32
  }
  func.func @transform_1(%arg0: i32, %arg1: i32) -> (i32, i32) {
    %c0_i32 = arith.constant 0 : i32
    %c0_i32_0 = arith.constant 0 : i32
    %c0_i32_1 = arith.constant 0 : i32
    return %c0_i32, %c0_i32_0 : i32, i32
  }
  func.func @transform_2(%arg0: i32, %arg1: i32) -> (i32, i32) {
    %c0_i32 = arith.constant 0 : i32
    %c0_i32_0 = arith.constant 0 : i32
    %c0_i32_1 = arith.constant 0 : i32
    return %c0_i32, %c0_i32_0 : i32, i32
  }
  func.func @transform_3(%arg0: i32, %arg1: i32) -> (i32, i32) {
    %c0_i32 = arith.constant 0 : i32
    %c0_i32_0 = arith.constant 0 : i32
    %c0_i32_1 = arith.constant 0 : i32
    return %c0_i32, %c0_i32_0 : i32, i32
  }
  func.func @transform_4(%arg0: i32, %arg1: i32) -> (i32, i32, i32) {
    %c0_i32 = arith.constant 0 : i32
    %c0_i32_0 = arith.constant 0 : i32
    return %arg0, %c0_i32, %arg1 : i32, i32, i32
  }
}

</mosaic_0001>

<bundles_post_ra>
// kernel: tpu_custom_call.1
= control target key start
LH: loop header
LB: loop body
LE: loop exit
PB: predicated region body
PF: predicated region fallthrough
CT: control target
= control target key end

     0   :  { %9 = vsyncpa [#allocation3], 0  ;;  %s1236_s0 = inlined_call_operand.vmem [shape: f32[2,4,256], index: 0, kind: input, shape index: {}]   ;;  %s1237_s1 = inlined_call_operand.vmem [shape: f32[128,4], index: 1, kind: input, shape index: {}]   ;;  %s1238_s2 = inlined_call_operand.vmem [shape: f32[128,1], index: 2, kind: input, shape index: {}]   ;;  %s1239_s3 = inlined_call_operand.vmem [shape: f32[4,128], index: 3, kind: input, shape index: {}]   ;;  %s1240_s4 = inlined_call_operand.hbm [shape: f32[2,4,256], index: 4, kind: output, shape index: {}]  }
   0x1   :  { %11 = vsyncpa [#allocation3 + $0x1], 0  ;;  %s992_s15 = smov 0   ;;  %s994_s16 = smov 0  }
   0x2   :  { %s996_s17 = smov 0   ;;  %s998_s18 = smov 0  }
   0x3   :  { %s1000_s19 = smov 0   ;;  %s1002_s20 = smov 0  }
   0x4 LB: > { %s759_s21 = sadd.s32 4294967295, %s962_s20   ;;  %s760_s22 = sadd.s32 4294967294, %s962_s20   ;;  %s962_s20 = sphi %s1002_s20, %s17_s20   ;;  %s958_s19 = sphi %s1000_s19, %s1247_s19   ;;  %s954_s18 = sphi %s998_s18, %s1246_s18   ;;  %s950_s17 = sphi %s996_s17, %s1245_s17   ;;  %s946_s16 = sphi %s994_s16, %s1244_s16   ;;  %s942_s15 = sphi %s992_s15, %s1243_s15  }
   0x5   : > { %s29_s23 = sadd.s32 1, %s958_s19  ;;  %s129_s24 = sadd.s32 1, %s950_s17 }
   0x6   : > { %p31_p0 = scmp.ge.s32.totalorder %s29_s23, 2  ;;  %p139_p1 = scmp.ne.s32.totalorder %s950_s17, %s946_s16 }
   0x7   : > { %p140_p2 = scmp.eq.s32.totalorder %s759_s21, 1  ;;  %p145_p3 = scmp.ne.s32.totalorder %s946_s16, %s942_s15 }
   0x8   : > { %s1249_s23 = smov (%p31_p0, %s29_s23), 0  ;;  %p146_p5 = scmp.eq.s32.totalorder %s760_s22, 1 }
   0x9   : > { %p1032_p4 = por %p140_p2, %p139_p1  ;;  %s124_s26 = ssub.s32 %s958_s19, %s1249_s23 }
   0xa   : > { %p763_p6 = scmp.ge.s32.totalorder %s962_s20, 1  ;;  %p127_p7 = scmp.eq.s32.totalorder %s124_s26, 0 }
   0xb   : > { %p1039_p8 = por %p146_p5, %p145_p3  ;;  %p186_p9 = scmp.lt.s32.totalorder %s962_s20, 3 }
   0xc   : > { %s1045_s28 = scalar_select %p127_p7, %s950_s17, %s129_s24  }
   0xd   : > { %p187_p10 = pnand %p763_p6, %p186_p9 }
   0xe   : > { %p217_p11 = scmp.lt.s32.totalorder (!%p187_p10), %s954_s18, 1  ;;  %v964_v0 = vmov (!%p187_p10), 0.0   ;;  %v965_v1 = vmov (!%p187_p10), 0   ;;  %v244_v2 = vld [vmem:[%s1238_s2] sm:$0xff] (!%p187_p10)  ;;  %vm391_vm0 = vcmask (!%p187_p10), 1043456   ;;  %v246_v4 = vld [vmem:[%s1238_s2 + $0x10] sm:$0xff] (!%p187_p10) }
   0xf   : > { %190 = sbr.rel (%p187_p10) target bundleno = 543 (0x21f), region = 36  ;;  %460 = vmatprep.mubr.f32.mxu0 (!%p187_p10), %v964_v0  ;;  %654 = vmatprep.mubr.f32.mxu1 (!%p187_p10), %v964_v0  ;;  %v245_v6 = vld [vmem:[%s1238_s2 + $0x8] sm:$0xff] (!%p187_p10)  ;;  %v228_v7 = vld [vmem:[%s1237_s1] sm:$0xff] (!%p187_p10)  ;;  %vm342_vm1 = vcmask (!%p187_p10), 31744   ;;  %v247_v8 = vld [vmem:[%s1238_s2 + $0x18] sm:$0xff] (!%p187_p10)  ;;  %s213_s10 = sand.u32 (!%p187_p10), 1, %s946_s16  }
  0x10   : > { %881 = vset.pattern.permute.xlu0 (!%p187_p10), %v965_v1  ;;  %882 = vset.pattern.permute.xlu1 (!%p187_p10), %v965_v1  ;;  %v248_v9 = vld [vmem:[%s1238_s2 + $0x20] sm:$0xff] (!%p187_p10)  ;;  %v229_v10 = vld [vmem:[%s1237_s1 + $0x8] sm:$0xff] (!%p187_p10)  ;;  %v250_v12 = vld [vmem:[%s1238_s2 + $0x30] sm:$0xff] (!%p187_p10)  ;;  %s764_s11 = sshll.u32 (!%p187_p10), %s213_s10, 3  ;;  %s791_s12 = sshll.u32 (!%p187_p10), %s954_s18, 7 }
  0x11   : > { %262 = vperm.xlu0 (!%p187_p10), %881, %v244_v2   ;;  %272 = vperm.xlu1 (!%p187_p10), %882, %v246_v4   ;;  %v249_v11 = vld [vmem:[%s1238_s2 + $0x28] sm:$0xff] (!%p187_p10)  ;;  %v230_v13 = vld [vmem:[%s1237_s1 + $0x10] sm:$0xff] (!%p187_p10)  ;;  %v251_v14 = vld [vmem:[%s1238_s2 + $0x38] sm:$0xff] (!%p187_p10)  ;;  %s215_s13 = scalar_lea.vmem (!%p187_p10), [#allocation2], %s764_s11  ;;  %s1189_s24 = scalar_lea.hbm (!%p187_p10), %s1240_s4, %s791_s12 }
  0x12   : > { %v252_v15 = vld [vmem:[%s1238_s2 + $0x40] sm:$0xff] (!%p187_p10)  ;;  %v231_v16 = vld [vmem:[%s1237_s1 + $0x18] sm:$0xff] (!%p187_p10)  ;;  %v253_v17 = vld [vmem:[%s1238_s2 + $0x48] sm:$0xff] (!%p187_p10)  ;;  %s683_s14 = sshll.u32 (!%p187_p10), %s215_s13, 4  ;;  %s667_s26 = scalar_lea.sflag (!%p187_p10), [#allocation3], %s213_s10  ;;  %s1191_s14 = int_to_ptr.vmem [resolvable:$true] %s683_s14 }
  0x13   : > { %v254_v18 = vld [vmem:[%s1238_s2 + $0x50] sm:$0xff] (!%p187_p10)  ;;  %v232_v19 = vld [vmem:[%s1237_s1 + $0x20] sm:$0xff] (!%p187_p10)  ;;  %v255_v20 = vld [vmem:[%s1238_s2 + $0x58] sm:$0xff] (!%p187_p10) }
  0x14   : > { %v256_v21 = vld [vmem:[%s1238_s2 + $0x60] sm:$0xff] (!%p187_p10)  ;;  %v233_v22 = vld [vmem:[%s1237_s1 + $0x28] sm:$0xff] (!%p187_p10)  ;;  %v258_v24 = vld [vmem:[%s1238_s2 + $0x70] sm:$0xff] (!%p187_p10) }
  0x15   : > { %267 = vperm.xlu0 (!%p187_p10), %881, %v245_v6   ;;  %277 = vperm.xlu1 (!%p187_p10), %882, %v247_v8   ;;  %v257_v23 = vld [vmem:[%s1238_s2 + $0x68] sm:$0xff] (!%p187_p10)  ;;  %v234_v25 = vld [vmem:[%s1237_s1 + $0x30] sm:$0xff] (!%p187_p10)  ;;  %v259_v26 = vld [vmem:[%s1238_s2 + $0x78] sm:$0xff] (!%p187_p10) }
  0x16   : > { %s218_s29 = scalar_select %p217_p11, %s954_s18, 1  ;;  %v235_v27 = vld [vmem:[%s1237_s1 + $0x38] sm:$0xff]  ;;  %v236_v28 = vld [vmem:[%s1237_s1 + $0x40] sm:$0xff]  ;;  %v237_v29 = vld [vmem:[%s1237_s1 + $0x48] sm:$0xff] }
  0x17   : > { %v238_v30 = vld [vmem:[%s1237_s1 + $0x50] sm:$0xff]  ;;  %v239_v31 = vld [vmem:[%s1237_s1 + $0x58] sm:$0xff]  ;;  %v240_v32 = vld [vmem:[%s1237_s1 + $0x60] sm:$0xff]  ;;  %s966_s18 = smov [#allocation2]  }
  0x18   : > { %s790_s30 = sshll.u32 %s218_s29, 3  ;;  %v241_v33 = vld [vmem:[%s1237_s1 + $0x68] sm:$0xff]  ;;  %v242_v34 = vld [vmem:[%s1237_s1 + $0x70] sm:$0xff]  ;;  %v243_v35 = vld [vmem:[%s1237_s1 + $0x78] sm:$0xff]  ;;  %s884_s29 = scalar_lea.vmem %s1191_s14, 128 }
  0x19   : > { %s224_s7 = scalar_lea.vmem %s1236_s0, %s790_s30  ;;  %282 = vperm.xlu0 %881, %v248_v9   ;;  %287 = vperm.xlu1 %882, %v249_v11   ;;  %p885_p12 = scmp.ne.s32.totalorder %s1191_s14, %s884_s29 }
  0x1a   : > { %v227_v3 = vld [vmem:[%s224_s7] sm:$0xff]  ;;  %s888_s30 = sshll.u32 %s966_s18, 4  ;;  %s889_s30 = int_to_ptr.vmem [resolvable:$false] %s888_s30 }
  0x1b   : > { %v341_v5 = vcombine.high %v227_v3, %v227_v3  ;;  %p886_p13 = pnand %p885_p12, %p1032_p4  ;;  %s890_s5 = scalar_lea.vmem %s889_s30, 256 }
  0x1c   : > { %p891_p1 = scmp.lt.s32.totalorder %s1191_s14, %s889_s30  ;;  %p892_p2 = scmp.lt.s32.totalorder %s890_s5, %s884_s29 }
  0x1d   : > { %767 = vmatprep.subr.msk.mxu0 %vm391_vm0, %v341_v5  ;;  %292 = vperm.xlu0 %881, %v250_v12   ;;  %p887_p0 = pneg %p886_p13 }
  0x1e   : > { %768 = vmatpush1.msk.msra.mxu0 %vm391_vm0, %v227_v3  ;;  %297 = vperm.xlu1 %882, %v251_v14   ;;  %p893_p3 = por %p892_p2, %p891_p1 }
  0x1f   : > { %769 = vmatmul.mubr.msk.f32.vlgmr.msra.gmra.mrb[0].mxu0 %vm342_vm1, %v228_v7 }
  0x20   : > { %466 = vmatprep.mubr.f32.mxu0 %v964_v0  ;;  %p894_p5 = pnand %p893_p3, %p887_p0 }
  0x21   : > { %302 = vperm.xlu0 %881, %v252_v15  }
  0x22   : > { %307 = vperm.xlu1 %882, %v253_v17  }
  0x23   : > { %770 = vmatmul.mubr.msk.f32.gmra.mrb[2].mxu0 %vm342_vm1, %v229_v10 }
  0x24   : > { %472 = vmatprep.mubr.f32.mxu0 %v964_v0 }
  0x25   : > { %312 = vperm.xlu0 %881, %v254_v18  }
  0x26   : > { %317 = vperm.xlu1 %882, %v255_v20  }
  0x27   : > { %771 = vmatmul.mubr.msk.f32.gmra.mrb[4].mxu0 %vm342_vm1, %v230_v13 }
  0x28   : > { %478 = vmatprep.mubr.f32.mxu0 %v964_v0 }
  0x29   : > { %322 = vperm.xlu0 %881, %v256_v21  }
  0x2a   : > { %327 = vperm.xlu1 %882, %v257_v23  }
  0x2b   : > { %772 = vmatmul.mubr.msk.f32.gmra.mrb[6].mxu0 %vm342_vm1, %v231_v16 }
  0x2c   : > { %484 = vmatprep.mubr.f32.mxu0 %v964_v0 }
  0x2d   : > { %332 = vperm.xlu0 %881, %v258_v24  }
  0x2e   : > { %337 = vperm.xlu1 %882, %v259_v26  }
  0x2f   : > { %773 = vmatmul.mubr.msk.f32.gmra.mrb[8].mxu0 %vm342_vm1, %v232_v19 }
  0x30   : > { %490 = vmatprep.mubr.f32.mxu0 %v964_v0 }
  0x33   : > { %774 = vmatmul.mubr.msk.f32.gmra.mrb[10].mxu0 %vm342_vm1, %v233_v22 }
  0x34   : > { %496 = vmatprep.mubr.f32.mxu0 %v964_v0 }
  0x37   : > { %775 = vmatmul.mubr.msk.f32.gmra.mrb[12].mxu0 %vm342_vm1, %v234_v25 }
  0x38   : > { %502 = vmatprep.mubr.f32.mxu0 %v964_v0 }
  0x3b   : > { %776 = vmatmul.mubr.msk.f32.gmra.mrb[14].mxu0 %vm342_vm1, %v235_v27 }
  0x3c   : > { %508 = vmatprep.mubr.f32.mxu0 %v964_v0 }
  0x3f   : > { %777 = vmatmul.mubr.msk.f32.gmra.mrb[16].mxu0 %vm342_vm1, %v236_v28 }
  0x40   : > { %514 = vmatprep.mubr.f32.mxu0 %v964_v0 }
  0x43   : > { %778 = vmatmul.mubr.msk.f32.gmra.mrb[18].mxu0 %vm342_vm1, %v237_v29 }
  0x44   : > { %520 = vmatprep.mubr.f32.mxu0 %v964_v0 }
  0x47   : > { %779 = vmatmul.mubr.msk.f32.gmra.mrb[20].mxu0 %vm342_vm1, %v238_v30 }
  0x48   : > { %526 = vmatprep.mubr.f32.mxu0 %v964_v0 }
  0x4b   : > { %780 = vmatmul.mubr.msk.f32.gmra.mrb[22].mxu0 %vm342_vm1, %v239_v31 }
  0x4c   : > { %532 = vmatprep.mubr.f32.mxu0 %v964_v0 }
  0x4f   : > { %781 = vmatmul.mubr.msk.f32.gmra.mrb[24].mxu0 %vm342_vm1, %v240_v32 }
  0x50   : > { %538 = vmatprep.mubr.f32.mxu0 %v964_v0 }
  0x53   : > { %782 = vmatmul.mubr.msk.f32.gmra.mrb[26].mxu0 %vm342_vm1, %v241_v33 }
  0x54   : > { %544 = vmatprep.mubr.f32.mxu0 %v964_v0 }
  0x57   : > { %783 = vmatmul.mubr.msk.f32.gmra.mrb[28].mxu0 %vm342_vm1, %v242_v34 }
  0x58   : > { %550 = vmatprep.mubr.f32.mxu0 %v964_v0 }
  0x5b   : > { %784 = vmatmul.mubr.msk.f32.gmra.mrb[30].mxu0 %vm342_vm1, %v243_v35 }
  0x90   : > { %v263_v36 = vpop.permute.xlu0 %262  ;;  %v273_v45 = vpop.permute.xlu1 %272 }
  0x94   : > { %v268_v39 = vpop.permute.xlu0 %267  ;;  %v278_v56 = vpop.permute.xlu1 %277 }
  0x98   : > { %v283_v5 = vpop.permute.xlu0 %282  ;;  %v288_v8 = vpop.permute.xlu1 %287 }
  0x9c   : > { %v293_v21 = vpop.permute.xlu0 %292 }
  0x9d   : > { %v298_v24 = vpop.permute.xlu1 %297 }
  0xf2   : > { %v462_v37 = vpop.f32.mrb[0].mxu0 }
  0xf3   : > { %v464_v38 = vpop.f32.mrb[1].mxu0  ;;  %v463_v40 = vadd.f32 %v462_v37, %v263_v36  ;;  %v303_v37 = vpop.permute.xlu0 %302 }
  0xf4   : > { %v465_v41 = vadd.f32 %v464_v38, %v263_v36 }
  0xf5   : > { %v557_v47 = vmax.f32 %v463_v40, 0.0  ;;  %v308_v40 = vpop.permute.xlu1 %307 }
  0xf6   : > { %v468_v42 = vpop.f32.mrb[2].mxu0  ;;  %v558_v49 = vmax.f32 %v465_v41, 0.0 }
  0xf7   : > { %v469_v43 = vadd.f32 %v468_v42, %v268_v39  ;;  %v470_v44 = vpop.f32.mrb[3].mxu0 }
  0xf8   : > { %v471_v46 = vadd.f32 %v470_v44, %v268_v39 }
  0xf9   : > { %v559_v48 = vmax.f32 %v469_v43, 0.0 }
  0xfa   : > { %v560_v50 = vmax.f32 %v471_v46, 0.0  ;;  %v474_v51 = vpop.f32.mrb[4].mxu0 }
  0xfb   : > { %v476_v52 = vpop.f32.mrb[5].mxu0  ;;  %v794_v53 = vpack.c.bf16 %v559_v48, %v557_v47  ;;  %v475_v55 = vadd.f32 %v474_v51, %v273_v45 }
  0xfc   : > { %v792_v54 = vpack.c.bf16 %v560_v50, %v558_v49  ;;  %v477_v57 = vadd.f32 %v476_v52, %v273_v45 }
  0xfd   : > { %v561_v62 = vmax.f32 %v475_v55, 0.0 }
  0xfe   : > { %v480_v58 = vpop.f32.mrb[6].mxu0  ;;  %793 = vmatprep.subr.bf16.mxu1 %v792_v54  ;;  %v562_v0 = vmax.f32 %v477_v57, 0.0 }
  0xff   : > { %v481_v59 = vadd.f32 %v480_v58, %v278_v56  ;;  %v482_v60 = vpop.f32.mrb[7].mxu0  ;;  %795 = vmatpush1.bf16.msra.mxu1 %v794_v53  ;;  %v313_v53 = vpop.permute.xlu0 %312 }
 0x100   : > { %v483_v61 = vadd.f32 %v482_v60, %v278_v56  ;;  %v318_v56 = vpop.permute.xlu1 %317 }
 0x101   : > { %v563_v63 = vmax.f32 %v481_v59, 0.0 }
 0x102   : > { %v564_v1 = vmax.f32 %v483_v61, 0.0  ;;  %v486_v2 = vpop.f32.mrb[8].mxu0 }
 0x103   : > { %v798_v3 = vpack.c.bf16 %v563_v63, %v561_v62  ;;  %v488_v4 = vpop.f32.mrb[9].mxu0  ;;  %v487_v7 = vadd.f32 %v486_v2, %v283_v5 }
 0x104   : > { %v796_v6 = vpack.c.bf16 %v564_v1, %v562_v0  ;;  %v489_v9 = vadd.f32 %v488_v4, %v283_v5  ;;  %v323_v5 = vpop.permute.xlu0 %322 }
 0x105   : > { %v565_v14 = vmax.f32 %v487_v7, 0.0 }
 0x106   : > { %v492_v10 = vpop.f32.mrb[10].mxu0  ;;  %797 = vmatprep.subr.bf16.mxu1 %v796_v6  ;;  %v566_v16 = vmax.f32 %v489_v9, 0.0 }
 0x107   : > { %v493_v11 = vadd.f32 %v492_v10, %v288_v8  ;;  %v494_v12 = vpop.f32.mrb[11].mxu0  ;;  %799 = vmatpush1.bf16.msra.mxu1 %v798_v3 }
 0x108   : > { %v495_v13 = vadd.f32 %v494_v12, %v288_v8  ;;  %v328_v8 = vpop.permute.xlu1 %327 }
 0x109   : > { %v567_v15 = vmax.f32 %v493_v11, 0.0 }
 0x10a   : > { %v568_v17 = vmax.f32 %v495_v13, 0.0  ;;  %v498_v18 = vpop.f32.mrb[12].mxu0 }
 0x10b   : > { %v802_v19 = vpack.c.bf16 %v567_v15, %v565_v14  ;;  %v500_v20 = vpop.f32.mrb[13].mxu0  ;;  %v499_v23 = vadd.f32 %v498_v18, %v293_v21 }
 0x10c   : > { %v800_v22 = vpack.c.bf16 %v568_v17, %v566_v16  ;;  %v501_v25 = vadd.f32 %v500_v20, %v293_v21  ;;  %v333_v21 = vpop.permute.xlu0 %332 }
 0x10d   : > { %v569_v30 = vmax.f32 %v499_v23, 0.0 }
 0x10e   : > { %v504_v26 = vpop.f32.mrb[14].mxu0  ;;  %801 = vmatprep.subr.bf16.mxu1 %v800_v22  ;;  %v570_v32 = vmax.f32 %v501_v25, 0.0 }
 0x10f   : > { %v505_v27 = vadd.f32 %v504_v26, %v298_v24  ;;  %v506_v28 = vpop.f32.mrb[15].mxu0  ;;  %803 = vmatpush1.bf16.msra.mxu1 %v802_v19 }
 0x110   : > { %v507_v29 = vadd.f32 %v506_v28, %v298_v24  ;;  %v338_v24 = vpop.permute.xlu1 %337 }
 0x111   : > { %v571_v31 = vmax.f32 %v505_v27, 0.0 }
 0x112   : > { %v572_v33 = vmax.f32 %v507_v29, 0.0  ;;  %v510_v34 = vpop.f32.mrb[16].mxu0 }
 0x113   : > { %v806_v35 = vpack.c.bf16 %v571_v31, %v569_v30  ;;  %v512_v36 = vpop.f32.mrb[17].mxu0  ;;  %v511_v39 = vadd.f32 %v510_v34, %v303_v37 }
 0x114   : > { %v804_v38 = vpack.c.bf16 %v572_v33, %v570_v32  ;;  %v513_v41 = vadd.f32 %v512_v36, %v303_v37  ;;  %v589_v36 = vld [vmem:[%s1239_s3] sm:$0xf] }
 0x115   : > { %v573_v46 = vmax.f32 %v511_v39, 0.0 }
 0x116   : > { %v516_v42 = vpop.f32.mrb[18].mxu0  ;;  %805 = vmatprep.subr.bf16.mxu1 %v804_v38  ;;  %v574_v48 = vmax.f32 %v513_v41, 0.0 }
 0x117   : > { %v517_v43 = vadd.f32 %v516_v42, %v308_v40  ;;  %v518_v44 = vpop.f32.mrb[19].mxu0  ;;  %807 = vmatpush1.bf16.msra.mxu1 %v806_v35 }
 0x118   : > { %v519_v45 = vadd.f32 %v518_v44, %v308_v40 }
 0x119   : > { %v575_v47 = vmax.f32 %v517_v43, 0.0 }
 0x11a   : > { %v576_v49 = vmax.f32 %v519_v45, 0.0  ;;  %v522_v50 = vpop.f32.mrb[20].mxu0 }
 0x11b   : > { %v810_v51 = vpack.c.bf16 %v575_v47, %v573_v46  ;;  %v524_v52 = vpop.f32.mrb[21].mxu0  ;;  %v523_v55 = vadd.f32 %v522_v50, %v313_v53 }
 0x11c   : > { %v808_v54 = vpack.c.bf16 %v576_v49, %v574_v48  ;;  %v525_v57 = vadd.f32 %v524_v52, %v313_v53 }
 0x11d   : > { %v577_v62 = vmax.f32 %v523_v55, 0.0 }
 0x11e   : > { %v528_v58 = vpop.f32.mrb[22].mxu0  ;;  %809 = vmatprep.subr.bf16.mxu1 %v808_v54  ;;  %v578_v0 = vmax.f32 %v525_v57, 0.0 }
 0x11f   : > { %v529_v59 = vadd.f32 %v528_v58, %v318_v56  ;;  %v530_v60 = vpop.f32.mrb[23].mxu0  ;;  %811 = vmatpush1.bf16.msra.mxu1 %v810_v51 }
 0x120   : > { %v531_v61 = vadd.f32 %v530_v60, %v318_v56 }
 0x121   : > { %v579_v63 = vmax.f32 %v529_v59, 0.0 }
 0x122   : > { %v580_v1 = vmax.f32 %v531_v61, 0.0  ;;  %v534_v2 = vpop.f32.mrb[24].mxu0 }
 0x123   : > { %v814_v3 = vpack.c.bf16 %v579_v63, %v577_v62  ;;  %v536_v4 = vpop.f32.mrb[25].mxu0  ;;  %v535_v7 = vadd.f32 %v534_v2, %v323_v5 }
 0x124   : > { %v812_v6 = vpack.c.bf16 %v580_v1, %v578_v0  ;;  %v537_v9 = vadd.f32 %v536_v4, %v323_v5 }
 0x125   : > { %v581_v14 = vmax.f32 %v535_v7, 0.0 }
 0x126   : > { %v540_v10 = vpop.f32.mrb[26].mxu0  ;;  %813 = vmatprep.subr.bf16.mxu1 %v812_v6  ;;  %v582_v16 = vmax.f32 %v537_v9, 0.0 }
 0x127   : > { %v541_v11 = vadd.f32 %v540_v10, %v328_v8  ;;  %v542_v12 = vpop.f32.mrb[27].mxu0  ;;  %815 = vmatpush1.bf16.msra.mxu1 %v814_v3 }
 0x128   : > { %v543_v13 = vadd.f32 %v542_v12, %v328_v8 }
 0x129   : > { %v583_v15 = vmax.f32 %v541_v11, 0.0 }
 0x12a   : > { %v584_v17 = vmax.f32 %v543_v13, 0.0  ;;  %v546_v18 = vpop.f32.mrb[28].mxu0 }
 0x12b   : > { %v818_v19 = vpack.c.bf16 %v583_v15, %v581_v14  ;;  %v548_v20 = vpop.f32.mrb[29].mxu0  ;;  %v547_v23 = vadd.f32 %v546_v18, %v333_v21 }
 0x12c   : > { %v816_v22 = vpack.c.bf16 %v584_v17, %v582_v16  ;;  %v549_v25 = vadd.f32 %v548_v20, %v333_v21 }
 0x12d   : > { %v585_v30 = vmax.f32 %v547_v23, 0.0 }
 0x12e   : > { %v552_v26 = vpop.f32.mrb[30].mxu0  ;;  %817 = vmatprep.subr.bf16.mxu1 %v816_v22  ;;  %v586_v32 = vmax.f32 %v549_v25, 0.0 }
 0x12f   : > { %v553_v27 = vadd.f32 %v552_v26, %v338_v24  ;;  %v554_v28 = vpop.f32.mrb[31].mxu0  ;;  %819 = vmatpush1.bf16.msra.mxu1 %v818_v19 }
 0x130   : > { %v555_v29 = vadd.f32 %v554_v28, %v338_v24 }
 0x131   : > { %v587_v31 = vmax.f32 %v553_v27, 0.0 }
 0x132   : > { %v588_v33 = vmax.f32 %v555_v29, 0.0 }
 0x133   : > { %v822_v34 = vpack.c.bf16 %v587_v31, %v585_v30 }
 0x134   : > { %v820_v35 = vpack.c.bf16 %v588_v33, %v586_v32 }
 0x136   : > { %821 = vmatprep.subr.bf16.mxu1 %v820_v35 }
 0x137   : > { %823 = vmatpush1.bf16.msra.mxu1 %v822_v34 }
 0x13a   : > { %655 = vmatmul.mubr.f32.vlgmr.msra.gmra.mrb[0].mxu1 %v589_v36 }
 0x20d   : > { %v656_v37 = vpop.f32.mrb[0].mxu1 }
 0x20e   : > { %v658_v38 = vpop.f32.mrb[1].mxu1 }
 0x20f   : > { %v663_v39 = vcombine.low %v656_v37, %v658_v38 }
 0x211   : > { %665 = vst [vmem:[%s215_s13] sm:$0xff] %v663_v39 }
 0x212   : > { %897 = shalt.err (!%p894_p5)
}
 0x213   : > { %s898_s6 = scalar_lea.hbm %s1189_s24, 128  ;;  %s902_s9 = scalar_lea.hbm %s1240_s4, 256 }
 0x214   : > { %p899_p6 = scmp.ne.s32.totalorder %s1189_s24, %s898_s6  ;;  %p903_p10 = scmp.lt.u32.totalorder %s1189_s24, %s1240_s4 }
 0x215   : > { %p904_p11 = scmp.lt.u32.totalorder %s902_s9, %s898_s6  ;;  %p906_p13 = scmp.lt.u32.totalorder %s898_s6, %s1189_s24 }
 0x216   : > { %p900_p7 = pnand %p899_p6, %p1032_p4 }
 0x217   : > { %p905_p12 = por %p904_p11, %p903_p10 }
 0x218   : > { %p901_p9 = pneg %p900_p7 }
 0x219   : > { %p907_p0 = por %p906_p13, %p905_p12 }
 0x21b   : > { %p908_p1 = pnand %p907_p0, %p901_p9 }
 0x21d   : > { %911 = shalt.err (!%p908_p1)
}
 0x21e   : > { %824 = dma.vmem_to_hbm [thread:$0]  (%p1032_p4), %s1191_s14, 128, %s1189_s24, %s667_s26  }
 0x21f PF: > { %p830_p2 = scmp.ge.s32.totalorder %s962_s20, 2  ;;  %s695_s12 = sand.u32 1, %s942_s15  }
 0x220   : > { %s696_s13 = scalar_lea.sflag [#allocation3], %s695_s12 }
 0x221   : > { %p827_p3 = pnand %p830_p2, %p1039_p8 }
 0x223   : > { %937 = dma.done.wait (!%p827_p3), %s696_s13, 128  }
 0x224   : > { %939 = vsyncadd (!%p827_p3), %s696_s13, 4294967168  ;;  %s17_s20 = sadd.s32 1, %s962_s20   ;;  %s1243_s15 = smov %s946_s16 }
 0x225   : > { %p14_p5 = scmp.ge.s32.totalorder %s17_s20, 4   ;;  %s1244_s16 = smov %s950_s17 }
 0x226   : > { %s1245_s17 = smov %s1045_s28  ;;  %s1246_s18 = smov %s958_s19 }
 0x227   : > { %s1247_s19 = smov %s1249_s23  ;;  %16 = sbr.rel (!%p14_p5) target bundleno = 4 (0x4), region = 71 }
 0x22e   :  { %701 = vsyncpa [#allocation3], 1 }
 0x22f   :  { %703 = vsyncpa [#allocation3 + $0x1], 1 }

</bundles_post_ra>
